<compile_context>
chip_gen: v7x
topology: tpu7x:2x2x1
jax: 0.10.0
libtpu: 0.0.40
codegen_flags: <defaults>
</compile_context>

<pallas_src>
import jax
import jax.numpy as jnp
from jax.experimental import pallas as pl
from jax.experimental.pallas import tpu as pltpu

N_IN = 1024
N_HID = 256
N_OUT = 4
N_OUT_PAD = 128   # lane-dense padded logit / output width
MAX_TB = 512      # batch-tile rows per grid step (~2 MiB f32 x block, dbl-buffered)


def mlp_p_kernel(x_ref, w1t_ref, w2t_ref, o_ref):
    # x_ref:   [TB, 1024]   f32  (streamed activation block)
    # w1t_ref: [1024, 256]  bf16 (fc1.weight.T, resident in VMEM)
    # w2t_ref: [256, 128]   f32  (fc6.weight.T zero-padded to 128 lanes, resident)
    # o_ref:   [TB, 128]    f32  (softmax probs; only first N_OUT lanes valid)

    # fc1 + ReLU: bf16 operands on the MXU, f32 accumulation.
    x = x_ref[...].astype(jnp.bfloat16)
    h = jnp.dot(x, w1t_ref[...], preferred_element_type=jnp.float32)
    h = jnp.maximum(h, 0.0)

    # fc6 -> padded logits [TB, 128] (lane-dense MXU pass).
    logits = jnp.dot(h, w2t_ref[...], preferred_element_type=jnp.float32)

    # Numerically-stable softmax over the first N_OUT lanes only.
    lane = jax.lax.broadcasted_iota(jnp.int32, logits.shape, dimension=1)
    valid = lane < N_OUT
    logits = jnp.where(valid, logits, -jnp.inf)
    m = jnp.max(logits, axis=-1, keepdims=True)
    e = jnp.where(valid, jnp.exp(logits - m), 0.0)
    denom = jnp.sum(e, axis=-1, keepdims=True)
    o_ref[...] = e * pl.reciprocal(denom, approx=False)


def prepare_params(w1, w2):
    """One-time parameter prep (do NOT call per forward):
    w1 [256, 1024] -> w1t [1024, 256] bf16; w2 [4, 256] -> w2t [256, 128] f32 (zero-padded)."""
    w1t = jnp.asarray(w1, jnp.float32).T.astype(jnp.bfloat16)
    w2t = jnp.zeros((N_HID, N_OUT_PAD), jnp.float32).at[:, :N_OUT].set(
        jnp.asarray(w2, jnp.float32).T)
    return w1t, w2t


@jax.jit
def mlp_p_forward(x, w1t, w2t):
    """x: [B, 1024] f32; w1t/w2t from prepare_params(). Returns [B, 4] softmax probs."""
    B = x.shape[0]
    tb = min(MAX_TB, B)
    bp = pl.cdiv(B, tb) * tb
    xp = x if bp == B else jnp.pad(x, ((0, bp - B), (0, 0)))

    out = pl.pallas_call(
        mlp_p_kernel,
        out_shape=jax.ShapeDtypeStruct((bp, N_OUT_PAD), jnp.float32),
        grid_spec=pltpu.PrefetchScalarGridSpec(
            num_scalar_prefetch=0,
            grid=(bp // tb,),
            in_specs=[
                pl.BlockSpec((tb, N_IN), lambda i: (i, 0)),          # streamed x
                pl.BlockSpec((N_IN, N_HID), lambda i: (0, 0)),       # resident w1t
                pl.BlockSpec((N_HID, N_OUT_PAD), lambda i: (0, 0)),  # resident w2t
            ],
            out_specs=pl.BlockSpec((tb, N_OUT_PAD), lambda i: (i, 0)),
        ),
        compiler_params=pltpu.CompilerParams(
            dimension_semantics=("parallel",),  # batch blocks independent -> both TCs on v7x
        ),
    )(xp, w1t, w2t)
    return out[:B, :N_OUT]


if __name__ == "__main__":
    key = jax.random.PRNGKey(0)
    kx, k1, k2 = jax.random.split(key, 3)

    B = 8
    x = jax.random.normal(kx, (B, N_IN), dtype=jnp.float32)

    # Deterministic synthetic weights, scaled like PyTorch's default init bound.
    w1 = jax.random.uniform(k1, (N_HID, N_IN), dtype=jnp.float32,
                            minval=-1.0, maxval=1.0) * (1.0 / N_IN ** 0.5)
    w2 = jax.random.uniform(k2, (N_OUT, N_HID), dtype=jnp.float32,
                            minval=-1.0, maxval=1.0) * (1.0 / N_HID ** 0.5)

    w1t, w2t = prepare_params(w1, w2)          # one-time, outside the hot path
    out = jax.block_until_ready(mlp_p_forward(x, w1t, w2t))

    # References:
    #  - full f32 module semantics (loose tol because the kernel uses bf16 fc1 operands)
    ref_f32 = jax.nn.softmax(jnp.maximum(x @ w1.T, 0.0) @ w2.T, axis=-1)
    #  - bf16-matched reference (same fc1 precision as the kernel)
    h_ref = jnp.maximum(
        jnp.dot(x.astype(jnp.bfloat16), w1t, preferred_element_type=jnp.float32), 0.0)
    ref_bf16 = jax.nn.softmax(h_ref @ w2.T, axis=-1)

    assert out.shape == (B, N_OUT)
    assert jnp.allclose(jnp.sum(out, axis=-1), 1.0, atol=1e-5)
    assert jnp.allclose(out, ref_bf16, atol=5e-3, rtol=5e-3)
    assert jnp.allclose(out, ref_f32, atol=3e-2, rtol=3e-2)

    print("KERNEL_OK")
</pallas_src>

<mosaic_0001>
module attributes {stable_mosaic.version = 11 : i64} {
  func.func @mlp_p_kernel(%arg0: i32, %arg1: memref<8x1024xf32, #tpu.memory_space<vmem>>, %arg2: memref<1024x256xbf16, #tpu.memory_space<vmem>>, %arg3: memref<256x128xf32, #tpu.memory_space<vmem>>, %arg4: memref<8x128xf32, #tpu.memory_space<vmem>>) attributes {dimension_semantics = [#tpu.dimension_semantics<parallel>], iteration_bounds = array<i64: 1>, scalar_prefetch = 0 : i64, scratch_operands = 0 : i64, tpu.core_type = #tpu.core_type<tc>, window_params = [{transform_indices = @transform_0, window_bounds = array<i64: 8, 1024>}, {pipeline_mode = #tpu.pipeline_mode<synchronous>, transform_indices = @transform_1, window_bounds = array<i64: 1024, 256>}, {pipeline_mode = #tpu.pipeline_mode<synchronous>, transform_indices = @transform_2, window_bounds = array<i64: 256, 128>}, {transform_indices = @transform_3, window_bounds = array<i64: 8, 128>}]} {
    %c0 = arith.constant 0 : index
    %c0_0 = arith.constant 0 : index
    %0 = vector.load %arg1[%c0, %c0_0] : memref<8x1024xf32, #tpu.memory_space<vmem>>, vector<8x1024xf32>
    %1 = arith.truncf %0 : vector<8x1024xf32> to vector<8x1024xbf16>
    %c0_1 = arith.constant 0 : index
    %c0_2 = arith.constant 0 : index
    %2 = vector.load %arg2[%c0_1, %c0_2] : memref<1024x256xbf16, #tpu.memory_space<vmem>>, vector<1024x256xbf16>
    %cst = arith.constant dense<0.000000e+00> : vector<8x256xf32>
    %3 = tpu.matmul %1, %2, %cst {dimension_numbers = #tpu.dot_dimension_numbers<[1], [0], [0], [1], [0, 0, 1, 1], [], []>} : vector<8x1024xbf16>, vector<1024x256xbf16>, vector<8x256xf32> -> vector<8x256xf32>
    %cst_3 = arith.constant 0.000000e+00 : f32
    %4 = vector.broadcast %cst_3 : f32 to vector<8x256xf32>
    %5 = arith.maximumf %3, %4 : vector<8x256xf32>
    %c0_4 = arith.constant 0 : index
    %c0_5 = arith.constant 0 : index
    %6 = vector.load %arg3[%c0_4, %c0_5] : memref<256x128xf32, #tpu.memory_space<vmem>>, vector<256x128xf32>
    %cst_6 = arith.constant dense<0.000000e+00> : vector<8x128xf32>
    %7 = tpu.matmul %5, %6, %cst_6 {dimension_numbers = #tpu.dot_dimension_numbers<[1], [0], [0], [1], [0, 0, 1, 1], [], []>} : vector<8x256xf32>, vector<256x128xf32>, vector<8x128xf32> -> vector<8x128xf32>
    %8 = tpu.iota {dimensions = array<i32: 1>} : vector<8x128xi32>
    %c4_i32 = arith.constant 4 : i32
    %9 = vector.broadcast %c4_i32 : i32 to vector<8x128xi32>
    %10 = arith.cmpi slt, %8, %9 : vector<8x128xi32>
    %cst_7 = arith.constant 0xFF800000 : f32
    %11 = vector.broadcast %cst_7 : f32 to vector<8x128xf32>
    %12 = arith.select %10, %7, %11 : vector<8x128xi1>, vector<8x128xf32>
    %cst_8 = arith.constant dense<0xFF800000> : vector<8xf32>
    %13 = vector.multi_reduction <maximumf>, %12, %cst_8 [1] : vector<8x128xf32> to vector<8xf32>
    %14 = vector.shape_cast %13 : vector<8xf32> to vector<8x1xf32>
    %15 = vector.broadcast %14 : vector<8x1xf32> to vector<8x128xf32>
    %16 = arith.subf %12, %15 : vector<8x128xf32>
    %17 = math.exp %16 : vector<8x128xf32>
    %cst_9 = arith.constant 0.000000e+00 : f32
    %18 = vector.broadcast %cst_9 : f32 to vector<8x128xf32>
    %19 = arith.select %10, %17, %18 : vector<8x128xi1>, vector<8x128xf32>
    %cst_10 = arith.constant dense<0.000000e+00> : vector<8xf32>
    %20 = vector.multi_reduction <add>, %19, %cst_10 [1] : vector<8x128xf32> to vector<8xf32>
    %21 = vector.shape_cast %20 : vector<8xf32> to vector<8x1xf32>
    %22 = tpu.reciprocal %21 : vector<8x1xf32> -> vector<8x1xf32>
    %23 = vector.broadcast %22 : vector<8x1xf32> to vector<8x128xf32>
    %24 = arith.mulf %19, %23 : vector<8x128xf32>
    %c0_11 = arith.constant 0 : index
    %c0_12 = arith.constant 0 : index
    %25 = vector.load %arg4[%c0_11, %c0_12] : memref<8x128xf32, #tpu.memory_space<vmem>>, vector<8x128xf32>
    tpu.vector_store %arg4[%c0_11, %c0_12], %24 {strides = array<i32>} : memref<8x128xf32, #tpu.memory_space<vmem>>, vector<8x128xf32>,
    return
  }
  func.func @transform_0(%arg0: i32) -> (i32, i32) {
    %c0_i32 = arith.constant 0 : i32
    %c0_i32_0 = arith.constant 0 : i32
    return %arg0, %c0_i32 : i32, i32
  }
  func.func @transform_1(%arg0: i32) -> (i32, i32) {
    %c0_i32 = arith.constant 0 : i32
    %c0_i32_0 = arith.constant 0 : i32
    %c0_i32_1 = arith.constant 0 : i32
    return %c0_i32, %c0_i32_0 : i32, i32
  }
  func.func @transform_2(%arg0: i32) -> (i32, i32) {
    %c0_i32 = arith.constant 0 : i32
    %c0_i32_0 = arith.constant 0 : i32
    %c0_i32_1 = arith.constant 0 : i32
    return %c0_i32, %c0_i32_0 : i32, i32
  }
  func.func @transform_3(%arg0: i32) -> (i32, i32) {
    %c0_i32 = arith.constant 0 : i32
    %c0_i32_0 = arith.constant 0 : i32
    return %arg0, %c0_i32 : i32, i32
  }
}

</mosaic_0001>

<bundles_post_ra>
// kernel: mlp_p_forward.1
= control target key start
LH: loop header
LB: loop body
LE: loop exit
PB: predicated region body
PF: predicated region fallthrough
CT: control target
= control target key end

     0   :  { %8 = vsyncpa [#allocation3], 0  ;;  %s1672_s0 = inlined_call_operand.hbm [shape: f32[8,1024], index: 0, kind: input, shape index: {}]   ;;  %s1673_s1 = inlined_call_operand.hbm [shape: bf16[1024,256], index: 1, kind: input, shape index: {}]   ;;  %s1674_s2 = inlined_call_operand.hbm [shape: f32[256,128], index: 2, kind: input, shape index: {}]   ;;  %s1675_s3 = inlined_call_operand.vmem [shape: f32[8,128], index: 3, kind: output, shape index: {}]  }
   0x1   :  { %9 = vsyncpa [#allocation5], 0  ;;  %s1602_s12 = smov [#allocation4]   ;;  %s1532_s16 = scalar_lea.hbm %s1673_s1, 16384 }
   0x2   :  { %s25_s13 = sshll.u32 %s1602_s12, 4  ;;  %p1533_p0 = scmp.ne.s32.totalorder %s1673_s1, %s1532_s16  ;;  %s26_s13 = int_to_ptr.vmem [resolvable:$true] %s25_s13 }
   0x3   :  { %p1536_p1 = scmp.lt.u32.totalorder %s1532_s16, %s1673_s1 }
   0x5   :  { %p1538_p2 = pnand %p1536_p1, %p1533_p0 }
   0x7   :  { %1541 = shalt.err (!%p1538_p2)
}
   0x8   :  { %s1542_s21 = scalar_lea.vmem %s26_s13, 16384  ;;  %p1547_p4 = scmp.lt.s32.totalorder %s26_s13, %s26_s13 }
   0x9   :  { %p1543_p3 = scmp.ne.s32.totalorder %s26_s13, %s1542_s21  ;;  %p1548_p5 = scmp.lt.s32.totalorder %s1542_s21, %s1542_s21 }
   0xb   :  { %p1549_p6 = por %p1548_p5, %p1547_p4 }
   0xd   :  { %p1550_p7 = pnand %p1549_p6, %p1543_p3 }
   0xf   :  { %1553 = shalt.err (!%p1550_p7)
}
  0x10   :  { %s1603_s22 = smov 128   ;;  %s1604_s23 = smov 8  }
  0x11   :  { %31 = dma.hbm_to_vmem [thread:$0]  %s1673_s1, 16384, %s26_s13, [#allocation5], %s1603_s22, %s1603_s22, %s1604_s23  }
  0x12   :  { %s1605_s26 = smov [#allocation2]   ;;  %s1606_s28 = smov [#allocation6]  }
  0x13   :  { %s16_s27 = sshll.u32 %s1605_s26, 4  ;;  %s37_s29 = sshll.u32 %s1606_s28, 4  ;;  %s17_s27 = int_to_ptr.vmem [resolvable:$true] %s16_s27  ;;  %s38_s29 = int_to_ptr.vmem [resolvable:$true] %s37_s29 }
  0x14   :  { %s1554_s5 = scalar_lea.hbm %s1672_s0, 1024 }
  0x15   :  { %p1555_p8 = scmp.ne.s32.totalorder %s1672_s0, %s1554_s5  ;;  %p1558_p9 = scmp.lt.u32.totalorder %s1554_s5, %s1672_s0 }
  0x17   :  { %p1560_p10 = pnand %p1558_p9, %p1555_p8 }
  0x19   :  { %1563 = shalt.err (!%p1560_p10)
}
  0x1a   :  { %s1564_s1 = scalar_lea.vmem %s17_s27, 1024  ;;  %p1569_p12 = scmp.lt.s32.totalorder %s17_s27, %s17_s27 }
  0x1b   :  { %p1565_p11 = scmp.ne.s32.totalorder %s17_s27, %s1564_s1  ;;  %p1570_p13 = scmp.lt.s32.totalorder %s1564_s1, %s1564_s1 }
  0x1d   :  { %p1571_p0 = por %p1570_p13, %p1569_p12 }
  0x1f   :  { %p1572_p1 = pnand %p1571_p0, %p1565_p11 }
  0x21   :  { %1575 = shalt.err (!%p1572_p1)
}
  0x22   :  { %19 = dma.hbm_to_vmem [thread:$0]  %s1672_s0, 1024, %s17_s27, [#allocation3]  }
  0x23   :  { %s1576_s14 = scalar_lea.hbm %s1674_s2, 4096 }
  0x24   :  { %p1577_p2 = scmp.ne.s32.totalorder %s1674_s2, %s1576_s14  ;;  %p1580_p3 = scmp.lt.u32.totalorder %s1576_s14, %s1674_s2 }
  0x26   :  { %p1582_p4 = pnand %p1580_p3, %p1577_p2 }
  0x28   :  { %1585 = shalt.err (!%p1582_p4)
}
  0x29   :  { %s1586_s19 = scalar_lea.vmem %s38_s29, 4096  ;;  %p1591_p6 = scmp.lt.s32.totalorder %s38_s29, %s38_s29 }
  0x2a   :  { %p1587_p5 = scmp.ne.s32.totalorder %s38_s29, %s1586_s19  ;;  %p1592_p7 = scmp.lt.s32.totalorder %s1586_s19, %s1586_s19 }
  0x2c   :  { %p1593_p8 = por %p1592_p7, %p1591_p6 }
  0x2e   :  { %p1594_p9 = pnand %p1593_p8, %p1587_p5 }
  0x30   :  { %1597 = shalt.err (!%p1594_p9)
}
  0x31   :  { %43 = dma.hbm_to_vmem [thread:$0]  %s1674_s2, 4096, %s38_s29, [#allocation5], %s1603_s22, %s1603_s22, %s1604_s23  }
  0x32   :  { %1598 = dma.done.wait [#allocation3], 1024  }
  0x33   :  { %1599 = vsyncadd [#allocation3], 4294966272 }
  0x34   :  { %1600 = dma.done.wait [#allocation5], 20480  }
  0x35   :  { %1601 = vsyncadd [#allocation5], 4294946816  ;;  %v1336_v0 = vld [vmem:[#allocation4 + $0x4] ss:$8 sps:$4 sm:$0xff]   ;;  %v1340_v2 = vld [vmem:[#allocation4] ss:$8 sps:$4 sm:$0xff]  }
  0x36   :  { %v1338_v1 = vld [vmem:[#allocation4 + $0x204] ss:$8 sps:$4 sm:$0xff]   ;;  %837 = vmatprep.subr.bf16.mxu1 %v1336_v0  ;;  %v1341_v3 = vld [vmem:[#allocation4 + $0x200] ss:$8 sps:$4 sm:$0xff]   ;;  %v1342_v4 = vld [vmem:[#allocation4 + $0x14] ss:$8 sps:$4 sm:$0xff]  }
  0x37   :  { %919 = vmatprep.subr.bf16.mxu0 %v1338_v1  ;;  %838 = vmatpush1.bf16.msra.mxu1 %v1340_v2  ;;  %v1344_v5 = vld [vmem:[#allocation4 + $0x214] ss:$8 sps:$4 sm:$0xff]   ;;  %v1346_v6 = vld [vmem:[#allocation4 + $0x10] ss:$8 sps:$4 sm:$0xff]   ;;  %v1348_v8 = vld [vmem:[#allocation4 + $0x24] ss:$8 sps:$4 sm:$0xff]  }
  0x38   :  { %920 = vmatpush1.bf16.msra.mxu0 %v1341_v3  ;;  %839 = vmatprep.subr.bf16.mxu1 %v1342_v4  ;;  %v1347_v7 = vld [vmem:[#allocation4 + $0x210] ss:$8 sps:$4 sm:$0xff]   ;;  %v1350_v9 = vld [vmem:[#allocation4 + $0x224] ss:$8 sps:$4 sm:$0xff]   ;;  %v1352_v10 = vld [vmem:[#allocation4 + $0x20] ss:$8 sps:$4 sm:$0xff]  }
  0x39   :  { %921 = vmatprep.subr.bf16.mxu0 %v1344_v5  ;;  %v1353_v11 = vld [vmem:[#allocation4 + $0x220] ss:$8 sps:$4 sm:$0xff]   ;;  %v1354_v12 = vld [vmem:[#allocation4 + $0x34] ss:$8 sps:$4 sm:$0xff]   ;;  %v1358_v14 = vld [vmem:[#allocation4 + $0x30] ss:$8 sps:$4 sm:$0xff]  }
  0x3a   :  { %v1356_v13 = vld [vmem:[#allocation4 + $0x234] ss:$8 sps:$4 sm:$0xff]   ;;  %v1359_v15 = vld [vmem:[#allocation4 + $0x230] ss:$8 sps:$4 sm:$0xff]   ;;  %v1360_v16 = vld [vmem:[#allocation4 + $0x44] ss:$8 sps:$4 sm:$0xff]  }
  0x3b   :  { %840 = vmatpush1.bf16.msra.mxu1 %v1346_v6  ;;  %v1362_v17 = vld [vmem:[#allocation4 + $0x244] ss:$8 sps:$4 sm:$0xff]   ;;  %v1364_v18 = vld [vmem:[#allocation4 + $0x40] ss:$8 sps:$4 sm:$0xff]   ;;  %v1366_v20 = vld [vmem:[#allocation4 + $0x54] ss:$8 sps:$4 sm:$0xff]  }
  0x3c   :  { %922 = vmatpush1.bf16.msra.mxu0 %v1347_v7  ;;  %841 = vmatprep.subr.bf16.mxu1 %v1348_v8  ;;  %v1365_v19 = vld [vmem:[#allocation4 + $0x240] ss:$8 sps:$4 sm:$0xff]   ;;  %v1368_v21 = vld [vmem:[#allocation4 + $0x254] ss:$8 sps:$4 sm:$0xff]   ;;  %v1370_v22 = vld [vmem:[#allocation4 + $0x50] ss:$8 sps:$4 sm:$0xff]  }
  0x3d   :  { %923 = vmatprep.subr.bf16.mxu0 %v1350_v9  ;;  %v1371_v23 = vld [vmem:[#allocation4 + $0x250] ss:$8 sps:$4 sm:$0xff]   ;;  %v1372_v24 = vld [vmem:[#allocation4 + $0x64] ss:$8 sps:$4 sm:$0xff]   ;;  %v1376_v26 = vld [vmem:[#allocation4 + $0x60] ss:$8 sps:$4 sm:$0xff]  }
  0x3e   :  { %v1374_v25 = vld [vmem:[#allocation4 + $0x264] ss:$8 sps:$4 sm:$0xff]   ;;  %v1377_v27 = vld [vmem:[#allocation4 + $0x260] ss:$8 sps:$4 sm:$0xff]   ;;  %v1378_v28 = vld [vmem:[#allocation4 + $0x74] ss:$8 sps:$4 sm:$0xff]  }
  0x3f   :  { %842 = vmatpush1.bf16.msra.mxu1 %v1352_v10  ;;  %v1380_v29 = vld [vmem:[#allocation4 + $0x274] ss:$8 sps:$4 sm:$0xff]   ;;  %v1382_v30 = vld [vmem:[#allocation4 + $0x70] ss:$8 sps:$4 sm:$0xff]   ;;  %v1384_v32 = vld [vmem:[#allocation4 + $0x84] ss:$8 sps:$4 sm:$0xff]  }
  0x40   :  { %924 = vmatpush1.bf16.msra.mxu0 %v1353_v11  ;;  %843 = vmatprep.subr.bf16.mxu1 %v1354_v12  ;;  %v1383_v31 = vld [vmem:[#allocation4 + $0x270] ss:$8 sps:$4 sm:$0xff]   ;;  %v1386_v33 = vld [vmem:[#allocation4 + $0x284] ss:$8 sps:$4 sm:$0xff]   ;;  %v1388_v34 = vld [vmem:[#allocation4 + $0x80] ss:$8 sps:$4 sm:$0xff]  }
  0x41   :  { %925 = vmatprep.subr.bf16.mxu0 %v1356_v13  ;;  %v1389_v35 = vld [vmem:[#allocation4 + $0x280] ss:$8 sps:$4 sm:$0xff]   ;;  %v1390_v36 = vld [vmem:[#allocation4 + $0x94] ss:$8 sps:$4 sm:$0xff]   ;;  %v1394_v38 = vld [vmem:[#allocation4 + $0x90] ss:$8 sps:$4 sm:$0xff]  }
  0x42   :  { %v1392_v37 = vld [vmem:[#allocation4 + $0x294] ss:$8 sps:$4 sm:$0xff]   ;;  %v1395_v39 = vld [vmem:[#allocation4 + $0x290] ss:$8 sps:$4 sm:$0xff]   ;;  %v1396_v40 = vld [vmem:[#allocation4 + $0xa4] ss:$8 sps:$4 sm:$0xff]  }
  0x43   :  { %844 = vmatpush1.bf16.msra.mxu1 %v1358_v14  ;;  %v1398_v41 = vld [vmem:[#allocation4 + $0x2a4] ss:$8 sps:$4 sm:$0xff]   ;;  %v1400_v42 = vld [vmem:[#allocation4 + $0xa0] ss:$8 sps:$4 sm:$0xff]   ;;  %v1402_v44 = vld [vmem:[#allocation4 + $0xb4] ss:$8 sps:$4 sm:$0xff]  }
  0x44   :  { %926 = vmatpush1.bf16.msra.mxu0 %v1359_v15  ;;  %845 = vmatprep.subr.bf16.mxu1 %v1360_v16  ;;  %v1401_v43 = vld [vmem:[#allocation4 + $0x2a0] ss:$8 sps:$4 sm:$0xff]   ;;  %v1404_v45 = vld [vmem:[#allocation4 + $0x2b4] ss:$8 sps:$4 sm:$0xff]   ;;  %v1406_v47 = vld [vmem:[#allocation4 + $0xb0] ss:$8 sps:$4 sm:$0xff]  }
  0x45   :  { %927 = vmatprep.subr.bf16.mxu0 %v1362_v17  ;;  %v54_v46 = vld [vmem:[#allocation2 + $0x8] sm:$0xff]  ;;  %v1407_v49 = vld [vmem:[#allocation4 + $0x2b0] ss:$8 sps:$4 sm:$0xff]   ;;  %v1414_v56 = vld [vmem:[#allocation4 + $0xd4] ss:$8 sps:$4 sm:$0xff]  }
  0x46   :  { %v62_v48 = vpack.c.bf16 %v54_v46, %v54_v46  ;;  %v58_v50 = vld [vmem:[#allocation2 + $0x28] sm:$0xff]  ;;  %v1416_v57 = vld [vmem:[#allocation4 + $0x2d4] ss:$8 sps:$4 sm:$0xff]   ;;  %v1418_v58 = vld [vmem:[#allocation4 + $0xd0] ss:$8 sps:$4 sm:$0xff]  }
  0x47   :  { %846 = vmatpush1.bf16.msra.mxu1 %v1364_v18  ;;  %v1408_v51 = vld [vmem:[#allocation4 + $0xc4] ss:$8 sps:$4 sm:$0xff]   ;;  %v66_v53 = vpack.c.bf16 %v58_v50, %v58_v50  ;;  %v1412_v54 = vld [vmem:[#allocation4 + $0xc0] ss:$8 sps:$4 sm:$0xff]   ;;  %v1419_v59 = vld [vmem:[#allocation4 + $0x2d0] ss:$8 sps:$4 sm:$0xff]  }
  0x48   :  { %928 = vmatpush1.bf16.msra.mxu0 %v1365_v19  ;;  %847 = vmatprep.subr.bf16.mxu1 %v1366_v20  ;;  %v1410_v52 = vld [vmem:[#allocation4 + $0x2c4] ss:$8 sps:$4 sm:$0xff]   ;;  %v1413_v55 = vld [vmem:[#allocation4 + $0x2c0] ss:$8 sps:$4 sm:$0xff]   ;;  %v1426_v0 = vld [vmem:[#allocation4 + $0xf4] ss:$8 sps:$4 sm:$0xff]  }
  0x49   :  { %929 = vmatprep.subr.bf16.mxu0 %v1368_v21  ;;  %869 = vmatprep.mubr.bf16.mxu1 %v62_v48  ;;  %v1420_v60 = vld [vmem:[#allocation4 + $0xe4] ss:$8 sps:$4 sm:$0xff]   ;;  %v1424_v62 = vld [vmem:[#allocation4 + $0xe0] ss:$8 sps:$4 sm:$0xff]   ;;  %v1428_v1 = vld [vmem:[#allocation4 + $0x2f4] ss:$8 sps:$4 sm:$0xff]  }
  0x4a   :  { %951 = vmatprep.mubr.bf16.mxu0 %v66_v53  ;;  %v1422_v61 = vld [vmem:[#allocation4 + $0x2e4] ss:$8 sps:$4 sm:$0xff]   ;;  %v1425_v63 = vld [vmem:[#allocation4 + $0x2e0] ss:$8 sps:$4 sm:$0xff]   ;;  %v1430_v2 = vld [vmem:[#allocation4 + $0xf0] ss:$8 sps:$4 sm:$0xff]  }
  0x4b   :  { %848 = vmatpush1.bf16.msra.mxu1 %v1370_v22  ;;  %v1431_v3 = vld [vmem:[#allocation4 + $0x2f0] ss:$8 sps:$4 sm:$0xff]   ;;  %v1434_v4 = vld [vmem:[#allocation4 + $0x104] ss:$8 sps:$4 sm:$0xff]   ;;  %v1432_v8 = vld [vmem:[#allocation4 + $0x100] ss:$8 sps:$4 sm:$0xff]  }
  0x4c   :  { %930 = vmatpush1.bf16.msra.mxu0 %v1371_v23  ;;  %849 = vmatprep.subr.bf16.mxu1 %v1372_v24  ;;  %v53_v5 = vld [vmem:[#allocation2] sm:$0xff]  ;;  %v1440_v12 = vld [vmem:[#allocation4 + $0x114] ss:$8 sps:$4 sm:$0xff]   ;;  %v1438_v14 = vld [vmem:[#allocation4 + $0x110] ss:$8 sps:$4 sm:$0xff]  }
  0x4d   :  { %931 = vmatprep.subr.bf16.mxu0 %v1374_v25  ;;  %v57_v6 = vld [vmem:[#allocation2 + $0x20] sm:$0xff]  ;;  %v61_v10 = vpack.c.bf16 %v53_v5, %v53_v5  ;;  %v1443_v13 = vld [vmem:[#allocation4 + $0x314] ss:$8 sps:$4 sm:$0xff]   ;;  %v1441_v15 = vld [vmem:[#allocation4 + $0x310] ss:$8 sps:$4 sm:$0xff]  }
  0x4e   :  { %v1437_v7 = vld [vmem:[#allocation4 + $0x304] ss:$8 sps:$4 sm:$0xff]   ;;  %v1435_v9 = vld [vmem:[#allocation4 + $0x300] ss:$8 sps:$4 sm:$0xff]   ;;  %v65_v11 = vpack.c.bf16 %v57_v6, %v57_v6  ;;  %v1452_v20 = vld [vmem:[#allocation4 + $0x134] ss:$8 sps:$4 sm:$0xff]  }
  0x4f   :  { %850 = vmatpush1.bf16.msra.mxu1 %v1376_v26  ;;  %v1446_v16 = vld [vmem:[#allocation4 + $0x124] ss:$8 sps:$4 sm:$0xff]   ;;  %v1444_v18 = vld [vmem:[#allocation4 + $0x120] ss:$8 sps:$4 sm:$0xff]   ;;  %v1455_v21 = vld [vmem:[#allocation4 + $0x334] ss:$8 sps:$4 sm:$0xff]  }
  0x50   :  { %932 = vmatpush1.bf16.msra.mxu0 %v1377_v27  ;;  %851 = vmatprep.subr.bf16.mxu1 %v1378_v28  ;;  %v1449_v17 = vld [vmem:[#allocation4 + $0x324] ss:$8 sps:$4 sm:$0xff]   ;;  %v1447_v19 = vld [vmem:[#allocation4 + $0x320] ss:$8 sps:$4 sm:$0xff]   ;;  %v1450_v22 = vld [vmem:[#allocation4 + $0x130] ss:$8 sps:$4 sm:$0xff]  }
  0x51   :  { %933 = vmatprep.subr.bf16.mxu0 %v1380_v29  ;;  %v1453_v23 = vld [vmem:[#allocation4 + $0x330] ss:$8 sps:$4 sm:$0xff]   ;;  %v1458_v24 = vld [vmem:[#allocation4 + $0x144] ss:$8 sps:$4 sm:$0xff]   ;;  %v1456_v26 = vld [vmem:[#allocation4 + $0x140] ss:$8 sps:$4 sm:$0xff]  }
  0x52   :  { %v1461_v25 = vld [vmem:[#allocation4 + $0x344] ss:$8 sps:$4 sm:$0xff]   ;;  %v1459_v27 = vld [vmem:[#allocation4 + $0x340] ss:$8 sps:$4 sm:$0xff]   ;;  %v1464_v28 = vld [vmem:[#allocation4 + $0x154] ss:$8 sps:$4 sm:$0xff]  }
  0x53   :  { %852 = vmatpush1.bf16.msra.mxu1 %v1382_v30  ;;  %v1467_v29 = vld [vmem:[#allocation4 + $0x354] ss:$8 sps:$4 sm:$0xff]   ;;  %v1462_v30 = vld [vmem:[#allocation4 + $0x150] ss:$8 sps:$4 sm:$0xff]   ;;  %v1480_v46 = vld [vmem:[#allocation4 + $0x180] ss:$8 sps:$4 sm:$0xff]  }
  0x54   :  { %934 = vmatpush1.bf16.msra.mxu0 %v1383_v31  ;;  %853 = vmatprep.subr.bf16.mxu1 %v1384_v32  ;;  %v1465_v31 = vld [vmem:[#allocation4 + $0x350] ss:$8 sps:$4 sm:$0xff]   ;;  %v1470_v32 = vld [vmem:[#allocation4 + $0x164] ss:$8 sps:$4 sm:$0xff]   ;;  %v1488_v48 = vld [vmem:[#allocation4 + $0x194] ss:$8 sps:$4 sm:$0xff]  }
  0x55   :  { %935 = vmatprep.subr.bf16.mxu0 %v1386_v33  ;;  %v1473_v33 = vld [vmem:[#allocation4 + $0x364] ss:$8 sps:$4 sm:$0xff]   ;;  %v1486_v50 = vld [vmem:[#allocation4 + $0x190] ss:$8 sps:$4 sm:$0xff]   ;;  %v1516_v6 = vld [vmem:[#allocation4 + $0x1e0] ss:$8 sps:$4 sm:$0xff]  }
  0x56   :  { %v1497_v53 = vld [vmem:[#allocation4 + $0x3a4] ss:$8 sps:$4 sm:$0xff]  }
  0x57   :  { %854 = vmatpush1.bf16.msra.mxu1 %v1388_v34  ;;  %v56_v34 = vld [vmem:[#allocation2 + $0x18] sm:$0xff]  ;;  %v1521_v5 = vld [vmem:[#allocation4 + $0x3e4] ss:$8 sps:$4 sm:$0xff]  }
  0x58   :  { %936 = vmatpush1.bf16.msra.mxu0 %v1389_v35  ;;  %855 = vmatprep.subr.bf16.mxu1 %v1390_v36  ;;  %v64_v35 = vpack.c.bf16 %v56_v34, %v56_v34  ;;  %v60_v36 = vld [vmem:[#allocation2 + $0x38] sm:$0xff] }
  0x59   :  { %937 = vmatprep.subr.bf16.mxu0 %v1392_v37  ;;  %v1468_v37 = vld [vmem:[#allocation4 + $0x160] ss:$8 sps:$4 sm:$0xff]   ;;  %v1026_v34 = vld [vmem:[#allocation6 + $0xb8] sm:$0xff] }
  0x5b   :  { %856 = vmatpush1.bf16.msra.mxu1 %v1394_v38  ;;  %v1471_v38 = vld [vmem:[#allocation4 + $0x360] ss:$8 sps:$4 sm:$0xff]  }
  0x5c   :  { %938 = vmatpush1.bf16.msra.mxu0 %v1395_v39  ;;  %857 = vmatprep.subr.bf16.mxu1 %v1396_v40  ;;  %v68_v39 = vpack.c.bf16 %v60_v36, %v60_v36  ;;  %v1476_v40 = vld [vmem:[#allocation4 + $0x174] ss:$8 sps:$4 sm:$0xff]  }
  0x5d   :  { %939 = vmatprep.subr.bf16.mxu0 %v1398_v41  ;;  %v1479_v41 = vld [vmem:[#allocation4 + $0x374] ss:$8 sps:$4 sm:$0xff]  }
  0x5f   :  { %858 = vmatpush1.bf16.msra.mxu1 %v1400_v42  ;;  %v1474_v42 = vld [vmem:[#allocation4 + $0x170] ss:$8 sps:$4 sm:$0xff]  }
  0x60   :  { %940 = vmatpush1.bf16.msra.mxu0 %v1401_v43  ;;  %859 = vmatprep.subr.bf16.mxu1 %v1402_v44  ;;  %v1477_v43 = vld [vmem:[#allocation4 + $0x370] ss:$8 sps:$4 sm:$0xff]   ;;  %v1482_v44 = vld [vmem:[#allocation4 + $0x184] ss:$8 sps:$4 sm:$0xff]  }
  0x61   :  { %941 = vmatprep.subr.bf16.mxu0 %v1404_v45  ;;  %v1485_v45 = vld [vmem:[#allocation4 + $0x384] ss:$8 sps:$4 sm:$0xff]  }
  0x63   :  { %860 = vmatpush1.bf16.msra.mxu1 %v1406_v47  ;;  %v1483_v47 = vld [vmem:[#allocation4 + $0x380] ss:$8 sps:$4 sm:$0xff]  }
  0x64   :  { %942 = vmatpush1.bf16.msra.mxu0 %v1407_v49  ;;  %861 = vmatprep.subr.bf16.mxu1 %v1408_v51  ;;  %v1491_v49 = vld [vmem:[#allocation4 + $0x394] ss:$8 sps:$4 sm:$0xff]   ;;  %v1489_v51 = vld [vmem:[#allocation4 + $0x390] ss:$8 sps:$4 sm:$0xff]  }
  0x65   :  { %943 = vmatprep.subr.bf16.mxu0 %v1410_v52  ;;  %v1494_v52 = vld [vmem:[#allocation4 + $0x1a4] ss:$8 sps:$4 sm:$0xff]  }
  0x67   :  { %862 = vmatpush1.bf16.msra.mxu1 %v1412_v54  ;;  %v1492_v54 = vld [vmem:[#allocation4 + $0x1a0] ss:$8 sps:$4 sm:$0xff]  }
  0x68   :  { %944 = vmatpush1.bf16.msra.mxu0 %v1413_v55  ;;  %863 = vmatprep.subr.bf16.mxu1 %v1414_v56  ;;  %v1495_v55 = vld [vmem:[#allocation4 + $0x3a0] ss:$8 sps:$4 sm:$0xff]   ;;  %v1500_v56 = vld [vmem:[#allocation4 + $0x1b4] ss:$8 sps:$4 sm:$0xff]  }
  0x69   :  { %945 = vmatprep.subr.bf16.mxu0 %v1416_v57  ;;  %v1503_v57 = vld [vmem:[#allocation4 + $0x3b4] ss:$8 sps:$4 sm:$0xff]  }
  0x6b   :  { %864 = vmatpush1.bf16.msra.mxu1 %v1418_v58  ;;  %v1498_v58 = vld [vmem:[#allocation4 + $0x1b0] ss:$8 sps:$4 sm:$0xff]  }
  0x6c   :  { %946 = vmatpush1.bf16.msra.mxu0 %v1419_v59  ;;  %865 = vmatprep.subr.bf16.mxu1 %v1420_v60  ;;  %v1501_v59 = vld [vmem:[#allocation4 + $0x3b0] ss:$8 sps:$4 sm:$0xff]   ;;  %v1506_v60 = vld [vmem:[#allocation4 + $0x1c4] ss:$8 sps:$4 sm:$0xff]  }
  0x6d   :  { %947 = vmatprep.subr.bf16.mxu0 %v1422_v61  ;;  %v1509_v61 = vld [vmem:[#allocation4 + $0x3c4] ss:$8 sps:$4 sm:$0xff]  }
  0x6f   :  { %866 = vmatpush1.bf16.msra.mxu1 %v1424_v62  ;;  %v1504_v62 = vld [vmem:[#allocation4 + $0x1c0] ss:$8 sps:$4 sm:$0xff]  }
  0x70   :  { %948 = vmatpush1.bf16.msra.mxu0 %v1425_v63  ;;  %867 = vmatprep.subr.bf16.mxu1 %v1426_v0  ;;  %v1507_v63 = vld [vmem:[#allocation4 + $0x3c0] ss:$8 sps:$4 sm:$0xff]   ;;  %v1512_v0 = vld [vmem:[#allocation4 + $0x1d4] ss:$8 sps:$4 sm:$0xff]  }
  0x71   :  { %949 = vmatprep.subr.bf16.mxu0 %v1428_v1  ;;  %v1515_v1 = vld [vmem:[#allocation4 + $0x3d4] ss:$8 sps:$4 sm:$0xff]  }
  0x73   :  { %868 = vmatpush1.bf16.msra.mxu1 %v1430_v2  ;;  %v1510_v2 = vld [vmem:[#allocation4 + $0x1d0] ss:$8 sps:$4 sm:$0xff]  }
  0x74   :  { %950 = vmatpush1.bf16.msra.mxu0 %v1431_v3  ;;  %878 = vmatprep.subr.bf16.mxu1 %v1434_v4  ;;  %v1513_v3 = vld [vmem:[#allocation4 + $0x3d0] ss:$8 sps:$4 sm:$0xff]   ;;  %v1518_v4 = vld [vmem:[#allocation4 + $0x1e4] ss:$8 sps:$4 sm:$0xff]  }
  0x75   :  { %960 = vmatprep.subr.bf16.mxu0 %v1437_v7  ;;  %v1519_v7 = vld [vmem:[#allocation4 + $0x3e0] ss:$8 sps:$4 sm:$0xff]  }
  0x76   :  { %870 = vmatmul.mubr.bf16.vlgmr.msra.gmra.mrb[0].mxu1 %v61_v10  ;;  %v1019_v10 = vld [vmem:[#allocation6 + $0x80] sm:$0xff] }
  0x77   :  { %952 = vmatmul.mubr.bf16.vlgmr.msra.gmra.mrb[0].mxu0 %v65_v11  ;;  %879 = vmatpush1.bf16.msra.mxu1 %v1432_v8  ;;  %v1524_v8 = vld [vmem:[#allocation4 + $0x1f4] ss:$8 sps:$4 sm:$0xff]   ;;  %v1020_v11 = vld [vmem:[#allocation6 + $0x88] sm:$0xff] }
  0x78   :  { %961 = vmatpush1.bf16.msra.mxu0 %v1435_v9  ;;  %880 = vmatprep.subr.bf16.mxu1 %v1440_v12  ;;  %v1527_v9 = vld [vmem:[#allocation4 + $0x3f4] ss:$8 sps:$4 sm:$0xff]   ;;  %v1522_v12 = vld [vmem:[#allocation4 + $0x1f0] ss:$8 sps:$4 sm:$0xff]  }
  0x79   :  { %962 = vmatprep.subr.bf16.mxu0 %v1443_v13  ;;  %910 = vmatprep.mubr.bf16.mxu1 %v64_v35  ;;  %v1525_v13 = vld [vmem:[#allocation4 + $0x3f0] ss:$8 sps:$4 sm:$0xff]  }
  0x7a   :  { %992 = vmatprep.mubr.bf16.mxu0 %v68_v39  ;;  %v1027_v39 = vld [vmem:[#allocation6 + $0xc0] sm:$0xff] }
  0x7b   :  { %881 = vmatpush1.bf16.msra.mxu1 %v1438_v14  ;;  %v55_v14 = vld [vmem:[#allocation2 + $0x10] sm:$0xff] }
  0x7c   :  { %963 = vmatpush1.bf16.msra.mxu0 %v1441_v15  ;;  %882 = vmatprep.subr.bf16.mxu1 %v1446_v16  ;;  %v59_v15 = vld [vmem:[#allocation2 + $0x30] sm:$0xff]  ;;  %v1289_v16 = vpack.c.bf16 %v1020_v11, %v1019_v10 }
  0x7d   :  { %964 = vmatprep.subr.bf16.mxu0 %v1449_v17  ;;  %v1003_v17 = vld [vmem:[#allocation6] sm:$0xff] }
  0x7f   :  { %883 = vmatpush1.bf16.msra.mxu1 %v1444_v18  ;;  %v1004_v18 = vld [vmem:[#allocation6 + $0x8] sm:$0xff] }
  0x80   :  { %965 = vmatpush1.bf16.msra.mxu0 %v1447_v19  ;;  %884 = vmatprep.subr.bf16.mxu1 %v1452_v20  ;;  %v1021_v19 = vld [vmem:[#allocation6 + $0x90] sm:$0xff]  ;;  %v1022_v20 = vld [vmem:[#allocation6 + $0x98] sm:$0xff] }
  0x81   :  { %966 = vmatprep.subr.bf16.mxu0 %v1455_v21  ;;  %v63_v21 = vpack.c.bf16 %v55_v14, %v55_v14 }
  0x83   :  { %885 = vmatpush1.bf16.msra.mxu1 %v1450_v22  ;;  %v67_v22 = vpack.c.bf16 %v59_v15, %v59_v15 }
  0x84   :  { %967 = vmatpush1.bf16.msra.mxu0 %v1453_v23  ;;  %886 = vmatprep.subr.bf16.mxu1 %v1458_v24  ;;  %v1291_v23 = vpack.c.bf16 %v1004_v18, %v1003_v17  ;;  %v1293_v24 = vpack.c.bf16 %v1022_v20, %v1021_v19 }
  0x85   :  { %968 = vmatprep.subr.bf16.mxu0 %v1461_v25  ;;  %v1005_v25 = vld [vmem:[#allocation6 + $0x10] sm:$0xff] }
  0x87   :  { %887 = vmatpush1.bf16.msra.mxu1 %v1456_v26  ;;  %v1006_v26 = vld [vmem:[#allocation6 + $0x18] sm:$0xff] }
  0x88   :  { %969 = vmatpush1.bf16.msra.mxu0 %v1459_v27  ;;  %888 = vmatprep.subr.bf16.mxu1 %v1464_v28  ;;  %v1023_v27 = vld [vmem:[#allocation6 + $0xa0] sm:$0xff]  ;;  %v1024_v28 = vld [vmem:[#allocation6 + $0xa8] sm:$0xff] }
  0x89   :  { %970 = vmatprep.subr.bf16.mxu0 %v1467_v29  ;;  %v1295_v29 = vpack.c.bf16 %v1006_v26, %v1005_v25 }
  0x8b   :  { %889 = vmatpush1.bf16.msra.mxu1 %v1462_v30  ;;  %v1297_v30 = vpack.c.bf16 %v1024_v28, %v1023_v27 }
  0x8c   :  { %971 = vmatpush1.bf16.msra.mxu0 %v1465_v31  ;;  %890 = vmatprep.subr.bf16.mxu1 %v1470_v32  ;;  %v1007_v31 = vld [vmem:[#allocation6 + $0x20] sm:$0xff]  ;;  %v1008_v32 = vld [vmem:[#allocation6 + $0x28] sm:$0xff] }
  0x8d   :  { %972 = vmatprep.subr.bf16.mxu0 %v1473_v33  ;;  %v1025_v33 = vld [vmem:[#allocation6 + $0xb0] sm:$0xff]  ;;  %v1299_v35 = vpack.c.bf16 %v1008_v32, %v1007_v31 }
  0x8e   :  { %v1301_v36 = vpack.c.bf16 %v1026_v34, %v1025_v33 }
  0x8f   :  { %891 = vmatpush1.bf16.msra.mxu1 %v1468_v37  ;;  %v1009_v37 = vld [vmem:[#allocation6 + $0x30] sm:$0xff] }
  0x90   :  { %973 = vmatpush1.bf16.msra.mxu0 %v1471_v38  ;;  %892 = vmatprep.subr.bf16.mxu1 %v1476_v40  ;;  %v1010_v38 = vld [vmem:[#allocation6 + $0x38] sm:$0xff]  ;;  %v1028_v40 = vld [vmem:[#allocation6 + $0xc8] sm:$0xff] }
  0x91   :  { %974 = vmatprep.subr.bf16.mxu0 %v1479_v41  ;;  %v1303_v41 = vpack.c.bf16 %v1010_v38, %v1009_v37 }
  0x93   :  { %893 = vmatpush1.bf16.msra.mxu1 %v1474_v42  ;;  %v1305_v42 = vpack.c.bf16 %v1028_v40, %v1027_v39 }
  0x94   :  { %975 = vmatpush1.bf16.msra.mxu0 %v1477_v43  ;;  %894 = vmatprep.subr.bf16.mxu1 %v1482_v44  ;;  %v1011_v43 = vld [vmem:[#allocation6 + $0x40] sm:$0xff]  ;;  %v1012_v44 = vld [vmem:[#allocation6 + $0x48] sm:$0xff] }
  0x95   :  { %976 = vmatprep.subr.bf16.mxu0 %v1485_v45  ;;  %v1029_v45 = vld [vmem:[#allocation6 + $0xd0] sm:$0xff] }
  0x97   :  { %895 = vmatpush1.bf16.msra.mxu1 %v1480_v46  ;;  %v1030_v46 = vld [vmem:[#allocation6 + $0xd8] sm:$0xff] }
  0x98   :  { %977 = vmatpush1.bf16.msra.mxu0 %v1483_v47  ;;  %896 = vmatprep.subr.bf16.mxu1 %v1488_v48  ;;  %v1307_v47 = vpack.c.bf16 %v1012_v44, %v1011_v43  ;;  %v1309_v48 = vpack.c.bf16 %v1030_v46, %v1029_v45 }
  0x99   :  { %978 = vmatprep.subr.bf16.mxu0 %v1491_v49  ;;  %v1013_v49 = vld [vmem:[#allocation6 + $0x50] sm:$0xff] }
  0x9b   :  { %897 = vmatpush1.bf16.msra.mxu1 %v1486_v50  ;;  %v1014_v50 = vld [vmem:[#allocation6 + $0x58] sm:$0xff] }
  0x9c   :  { %979 = vmatpush1.bf16.msra.mxu0 %v1489_v51  ;;  %898 = vmatprep.subr.bf16.mxu1 %v1494_v52  ;;  %v1031_v51 = vld [vmem:[#allocation6 + $0xe0] sm:$0xff]  ;;  %v1032_v52 = vld [vmem:[#allocation6 + $0xe8] sm:$0xff] }
  0x9d   :  { %980 = vmatprep.subr.bf16.mxu0 %v1497_v53  ;;  %v1311_v53 = vpack.c.bf16 %v1014_v50, %v1013_v49 }
  0x9f   :  { %899 = vmatpush1.bf16.msra.mxu1 %v1492_v54  ;;  %v1313_v54 = vpack.c.bf16 %v1032_v52, %v1031_v51 }
  0xa0   :  { %981 = vmatpush1.bf16.msra.mxu0 %v1495_v55  ;;  %900 = vmatprep.subr.bf16.mxu1 %v1500_v56  ;;  %v1015_v55 = vld [vmem:[#allocation6 + $0x60] sm:$0xff]  ;;  %v1016_v56 = vld [vmem:[#allocation6 + $0x68] sm:$0xff] }
  0xa1   :  { %982 = vmatprep.subr.bf16.mxu0 %v1503_v57  ;;  %v1315_v57 = vpack.c.bf16 %v1016_v56, %v1015_v55 }
  0xa3   :  { %901 = vmatpush1.bf16.msra.mxu1 %v1498_v58  ;;  %v1033_v58 = vld [vmem:[#allocation6 + $0xf0] sm:$0xff] }
  0xa4   :  { %983 = vmatpush1.bf16.msra.mxu0 %v1501_v59  ;;  %902 = vmatprep.subr.bf16.mxu1 %v1506_v60  ;;  %v1034_v59 = vld [vmem:[#allocation6 + $0xf8] sm:$0xff] }
  0xa5   :  { %984 = vmatprep.subr.bf16.mxu0 %v1509_v61  ;;  %v1317_v60 = vpack.c.bf16 %v1034_v59, %v1033_v58  ;;  %v1017_v61 = vld [vmem:[#allocation6 + $0x70] sm:$0xff] }
  0xa7   :  { %903 = vmatpush1.bf16.msra.mxu1 %v1504_v62  ;;  %v1018_v62 = vld [vmem:[#allocation6 + $0x78] sm:$0xff] }
  0xa8   :  { %985 = vmatpush1.bf16.msra.mxu0 %v1507_v63  ;;  %904 = vmatprep.subr.bf16.mxu1 %v1512_v0  ;;  %v1319_v63 = vpack.c.bf16 %v1018_v62, %v1017_v61 }
  0xa9   :  { %986 = vmatprep.subr.bf16.mxu0 %v1515_v1 }
  0xab   :  { %905 = vmatpush1.bf16.msra.mxu1 %v1510_v2 }
  0xac   :  { %987 = vmatpush1.bf16.msra.mxu0 %v1513_v3  ;;  %906 = vmatprep.subr.bf16.mxu1 %v1518_v4 }
  0xad   :  { %988 = vmatprep.subr.bf16.mxu0 %v1521_v5 }
  0xaf   :  { %907 = vmatpush1.bf16.msra.mxu1 %v1516_v6 }
  0xb0   :  { %989 = vmatpush1.bf16.msra.mxu0 %v1519_v7  ;;  %908 = vmatprep.subr.bf16.mxu1 %v1524_v8 }
  0xb1   :  { %990 = vmatprep.subr.bf16.mxu0 %v1527_v9 }
  0xb3   :  { %909 = vmatpush1.bf16.msra.mxu1 %v1522_v12  ;;  %v1105_v12 = vlaneseq }
  0xb4   :  { %991 = vmatpush1.bf16.msra.mxu0 %v1525_v13  ;;  %1290 = vmatprep.subr.bf16.mxu1 %v1289_v16 }
  0xb5   :  { %v1106_v13 = vand.u32 127, %v1105_v12 }
  0xb6   :  { %911 = vmatmul.mubr.bf16.vlgmr.msra.gmra.mrb[0].mxu1 %v63_v21 }
  0xb7   :  { %993 = vmatmul.mubr.bf16.vlgmr.msra.gmra.mrb[0].mxu0 %v67_v22  ;;  %1292 = vmatpush3.bf16.msra.mxu1 %v1291_v23  ;;  %vm1107_vm0 = vcmp.lt.s32.totalorder %v1106_v13, 4 }
  0xb8   :  { %1294 = vmatprep.subr.bf16.mxu1 %v1293_v24 }
  0xbb   :  { %1296 = vmatpush3.bf16.msra.mxu1 %v1295_v29 }
  0xbc   :  { %1298 = vmatprep.subr.bf16.mxu1 %v1297_v30 }
  0xbf   :  { %1300 = vmatpush3.bf16.msra.mxu1 %v1299_v35 }
  0xc0   :  { %1302 = vmatprep.subr.bf16.mxu1 %v1301_v36 }
  0xc3   :  { %1304 = vmatpush3.bf16.msra.mxu1 %v1303_v41 }
  0xc4   :  { %1306 = vmatprep.subr.bf16.mxu1 %v1305_v42 }
  0xc7   :  { %1308 = vmatpush3.bf16.msra.mxu1 %v1307_v47 }
  0xc8   :  { %1310 = vmatprep.subr.bf16.mxu1 %v1309_v48 }
  0xcb   :  { %1312 = vmatpush3.bf16.msra.mxu1 %v1311_v53 }
  0xcc   :  { %1314 = vmatprep.subr.bf16.mxu1 %v1313_v54 }
  0xcf   :  { %1316 = vmatpush3.bf16.msra.mxu1 %v1315_v57 }
  0xd0   :  { %1318 = vmatprep.subr.bf16.mxu1 %v1317_v60 }
  0xd3   :  { %1320 = vmatpush3.bf16.msra.mxu1 %v1319_v63 }
 0x189   :  { %v912_v0 = vpop.f32.mrb[0].mxu1 }
 0x18a   :  { %v994_v1 = vpop.f32.mrb[0].mxu0  ;;  %v914_v3 = vpop.f32.mrb[1].mxu1 }
 0x18b   :  { %v1321_v2 = vadd.f32 %v994_v1, %v912_v0  ;;  %v996_v4 = vpop.f32.mrb[1].mxu0  ;;  %v916_v6 = vpop.f32.mrb[2].mxu1 }
 0x18c   :  { %v1322_v5 = vadd.f32 %v996_v4, %v914_v3  ;;  %v998_v7 = vpop.f32.mrb[2].mxu0  ;;  %v917_v8 = vpop.f32.mrb[3].mxu1 }
 0x18d   :  { %v999_v9 = vpop.f32.mrb[3].mxu0  ;;  %v1001_v11 = vmax.f32 %v1321_v2, 0.0 }
 0x18e   :  { %v1002_v10 = vmax.f32 %v1322_v5, 0.0 }
 0x190   :  { %1099 = vmatprep.mubr.f32.mxu1 %v1002_v10 }
 0x191   :  { %1100 = vmatmul.mubr.f32.vlgmr.msra.gmra.mrb[4].mxu1 %v1001_v11 }
 0x264   :  { %v1286_v14 = vpop.f32.mrb[4].mxu1 }
 0x265   :  { %v1287_v15 = vpop.f32.mrb[5].mxu1 }
 0x266   :  { %v1288_v16 = vadd.f32 %v1287_v15, %v1286_v14 }
 0x268   :  { %v1108_v17 = vsel %vm1107_vm0, %v1288_v16, -inf }
 0x269   :  { %1109 = vmax.xlane.f32.xlu0 %v1108_v17 }
 0x2f6   :  { %v1110_v18 = vpop.xlane.xlu0 %1109 }
 0x2f7   :  { %v1111_v19 = vsub.f32 %v1108_v17, %v1110_v18 }
 0x2f9   :  { %v1112_v20 = vmul.f32 1.442695, %v1111_v19 }
 0x2fb   :  { %1528 = vpow2.f32 %v1112_v20 }
 0x305   :  { %v1529_v21 = vpop.eup %1528 }
 0x306   :  { %v1114_v22 = vsel %vm1107_vm0, %v1529_v21, 0.0 }
 0x307   :  { %1115 = vadd.xlane.f32.xlu0 %v1114_v22 }
 0x394   :  { %v1116_v23 = vpop.xlane.xlu0 %1115 }
 0x395   :  { %1530 = vrcp.f32 %v1116_v23 }
 0x39f   :  { %v1531_v24 = vpop.eup %1530 }
 0x3a0   :  { %v1118_v25 = vmul.f32 %v1531_v24, %v1114_v22 }
 0x3a2   :  { %1119 = vst [vmem:[%s1675_s3] sm:$0xff] %v1118_v25 }
 0x3a3   :  { %1124 = vsyncpa [#allocation3], 1 }
 0x3a4   :  { %1125 = vsyncpa [#allocation5], 1 }

</bundles_post_ra>
